<compile_context>
chip_gen: v7x
topology: tpu7x:2x2x1
jax: 0.10.0
libtpu: 0.0.40
codegen_flags: <defaults>
</compile_context>

<pallas_src>
import jax
import jax.numpy as jnp
from jax.experimental import pallas as pl
from jax.experimental.pallas import tpu as pltpu


def _round_up(x, m):
    return (x + m - 1) // m * m


def _pick_tm(batch, *, cap=512):
    """Batch tile: >= batch rounded to the 8-sublane minimum, <= cap, and when
    possible split so the batch grid has >= 2 steps (v7x megacore)."""
    tm = min(_round_up(batch, 8), cap)
    if _round_up(batch, 8) // tm < 2 and tm >= 16:
        tm = _round_up(tm // 2, 8)
    return tm


def _pick_tk(kp, *, cap=512):
    """K tile: a multiple of 128 that divides kp (kp is already 128-aligned)."""
    tk = min(kp, cap)
    while kp % tk:
        tk -= 128
    return tk


def classifier_kernel(x_ref, w1_ref, b1_ref, w2_ref, b2_ref, o_ref, acc_ref):
    k = pl.program_id(1)

    @pl.when(k == 0)
    def _init():
        # Fold the first-layer bias into the accumulator init.
        acc_ref[...] = jnp.broadcast_to(b1_ref[...], acc_ref.shape)

    # base_model partial matmul: acc += x_k @ W1_k (bf16 operands, f32 acc).
    acc_ref[...] += jnp.dot(
        x_ref[...].astype(jnp.bfloat16), w1_ref[...],
        preferred_element_type=jnp.float32)

    @pl.when(k == pl.num_programs(1) - 1)
    def _epilogue():
        # base_model nonlinearity + classifier: y = relu(h) @ W2 + b2.
        h = jnp.maximum(acc_ref[...], 0.0).astype(jnp.bfloat16)
        y = jnp.dot(h, w2_ref[...], preferred_element_type=jnp.float32)
        o_ref[...] = (y + b2_ref[...]).astype(o_ref.dtype)


def prepare_params(w1, b1, w2, b2):
    """Pad (to lane multiples of 128) and cast the parameters ONCE, outside the
    per-call forward.  MXU operands become bf16; biases stay f32."""
    in_features, hidden = w1.shape
    num_classes = w2.shape[1]
    kp, hp, cp = (_round_up(d, 128) for d in (in_features, hidden, num_classes))
    w1p = jnp.zeros((kp, hp), jnp.bfloat16).at[:in_features, :hidden].set(
        w1.astype(jnp.bfloat16))
    b1p = jnp.zeros((1, hp), jnp.float32).at[:, :hidden].set(b1.reshape(1, -1))
    w2p = jnp.zeros((hp, cp), jnp.bfloat16).at[:hidden, :num_classes].set(
        w2.astype(jnp.bfloat16))
    b2p = jnp.zeros((1, cp), jnp.float32).at[:, :num_classes].set(b2.reshape(1, -1))
    return {"w1": w1p, "b1": b1p, "w2": w2p, "b2": b2p,
            "in_features": in_features, "hidden": hidden,
            "num_classes": num_classes}


def _spec(block_shape, index_map, pipeline_mode):
    if pipeline_mode is None:
        return pl.BlockSpec(block_shape, index_map)
    return pl.BlockSpec(block_shape, index_map, pipeline_mode=pipeline_mode)


def _pallas_forward(xp, w1p, b1p, w2p, b2p, *, tm, tk, single_buffer_pinned):
    bp, kp = xp.shape
    hp, cp = w2p.shape
    n_k = kp // tk

    pinned_mode = pl.Buffered(1) if single_buffer_pinned else None
    # W1 streams over k (default double buffering) unless it has a single K
    # block, in which case it is pinned like the other weights.
    w1_mode = pinned_mode if n_k == 1 else None

    flops = 2 * bp * (kp * hp + hp * cp)
    bytes_accessed = (xp.size * xp.dtype.itemsize
                      + w1p.size * w1p.dtype.itemsize
                      + w2p.size * w2p.dtype.itemsize
                      + b1p.size * b1p.dtype.itemsize
                      + b2p.size * b2p.dtype.itemsize
                      + bp * cp * 4)

    return pl.pallas_call(
        classifier_kernel,
        out_shape=jax.ShapeDtypeStruct((bp, cp), jnp.float32),
        grid=(bp // tm, n_k),
        in_specs=[
            _spec((tm, tk), lambda i, k: (i, k), None),        # x tile (streamed)
            _spec((tk, hp), lambda i, k: (k, 0), w1_mode),     # W1 k-slice
            _spec((1, hp), lambda i, k: (0, 0), pinned_mode),  # b1 (pinned)
            _spec((hp, cp), lambda i, k: (0, 0), pinned_mode), # W2 (pinned)
            _spec((1, cp), lambda i, k: (0, 0), pinned_mode),  # b2 (pinned)
        ],
        out_specs=pl.BlockSpec((tm, cp), lambda i, k: (i, 0)),
        scratch_shapes=[pltpu.VMEM((tm, hp), jnp.float32)],
        compiler_params=pltpu.CompilerParams(
            dimension_semantics=("parallel", "arbitrary"),
            vmem_limit_bytes=64 * 1024 * 1024,
        ),
        cost_estimate=pl.CostEstimate(
            flops=flops, transcendentals=0, bytes_accessed=bytes_accessed),
    )(xp, w1p, b1p, w2p, b2p)


def classifier_forward(x, params, *, tm=None, tk=None):
    batch, in_features = x.shape
    assert in_features == params["in_features"]
    w1p, b1p, w2p, b2p = params["w1"], params["b1"], params["w2"], params["b2"]
    kp, hp = w1p.shape

    if tm is None:
        tm = _pick_tm(batch)
    if tk is None:
        tk = _pick_tk(kp)
    bp = _round_up(batch, tm)

    # Only the activation needs per-call handling, and only when it is not
    # already tile-aligned; aligned inputs stream straight into the kernel
    # (no extra HBM pass) and are cast to bf16 inside the kernel body.
    if (bp, kp) == (batch, in_features):
        xp = x
    else:
        xp = jnp.zeros((bp, kp), x.dtype).at[:batch, :in_features].set(x)

    try:
        out = _pallas_forward(xp, w1p, b1p, w2p, b2p, tm=tm, tk=tk,
                              single_buffer_pinned=True)
    except Exception:
        # pl.Buffered(1) not supported by this jax/backend: fall back to the
        # default double-buffered pinned operands (correct, more VMEM).
        out = _pallas_forward(xp, w1p, b1p, w2p, b2p, tm=tm, tk=tk,
                              single_buffer_pinned=False)

    # Slice away batch / class padding outside the kernel.
    return out[:batch, :params["num_classes"]]


def init_params(key, in_features, hidden, num_classes):
    """Deterministic PyTorch-style init: U(-1/sqrt(fan_in), 1/sqrt(fan_in))."""
    k1, k2, k3, k4 = jax.random.split(key, 4)
    bound1 = 1.0 / jnp.sqrt(jnp.float32(in_features))
    bound2 = 1.0 / jnp.sqrt(jnp.float32(hidden))
    w1 = jax.random.uniform(k1, (in_features, hidden), jnp.float32, -bound1, bound1)
    b1 = jax.random.uniform(k2, (hidden,), jnp.float32, -bound1, bound1)
    w2 = jax.random.uniform(k3, (hidden, num_classes), jnp.float32, -bound2, bound2)
    b2 = jax.random.uniform(k4, (num_classes,), jnp.float32, -bound2, bound2)
    return w1, b1, w2, b2


if __name__ == "__main__":
    batch, in_features, hidden, num_classes = 8, 128, 256, 16

    key = jax.random.PRNGKey(0)
    kx, kparam = jax.random.split(key)
    x = jax.random.normal(kx, (batch, in_features), jnp.float32)
    w1, b1, w2, b2 = init_params(kparam, in_features, hidden, num_classes)

    params = prepare_params(w1, b1, w2, b2)   # one-time pad/cast, not per call
    out = classifier_forward(x, params)
    jax.block_until_ready(out)

    # Reference with the same bf16-operand / f32-accumulate recipe as the kernel.
    xb, w1b, w2b = (t.astype(jnp.bfloat16) for t in (x, w1, w2))
    h_ref = jnp.maximum(
        jnp.dot(xb, w1b, preferred_element_type=jnp.float32) + b1[None, :], 0.0)
    ref = jnp.dot(h_ref.astype(jnp.bfloat16), w2b,
                  preferred_element_type=jnp.float32) + b2[None, :]

    assert out.shape == (batch, num_classes)
    assert jnp.allclose(out, ref, atol=1e-3, rtol=1e-3)

    # Loose sanity check against the full-f32 math (bf16 rounding tolerance).
    ref_f32 = jnp.maximum(x @ w1 + b1[None, :], 0.0) @ w2 + b2[None, :]
    assert jnp.allclose(out, ref_f32, atol=5e-2, rtol=5e-2)

    print("KERNEL_OK")
</pallas_src>

<mosaic_0001>
module attributes {stable_mosaic.version = 11 : i64} {
  func.func @classifier_kernel(%arg0: i32, %arg1: i32, %arg2: memref<8x128xf32, #tpu.memory_space<vmem>>, %arg3: memref<128x256xbf16, #tpu.memory_space<vmem>>, %arg4: memref<1x256xf32, #tpu.memory_space<vmem>>, %arg5: memref<256x128xbf16, #tpu.memory_space<vmem>>, %arg6: memref<1x128xf32, #tpu.memory_space<vmem>>, %arg7: memref<8x128xf32, #tpu.memory_space<vmem>>, %arg8: memref<8x256xf32, #tpu.memory_space<vmem>>) attributes {dimension_semantics = [#tpu.dimension_semantics<parallel>, #tpu.dimension_semantics<arbitrary>], iteration_bounds = array<i64: 1, 1>, scalar_prefetch = 0 : i64, scratch_operands = 1 : i64, tpu.core_type = #tpu.core_type<tc>, window_params = [{transform_indices = @transform_0, window_bounds = array<i64: 8, 128>}, {pipeline_mode = #tpu.pipeline_mode<synchronous>, transform_indices = @transform_1, window_bounds = array<i64: 128, 256>}, {pipeline_mode = #tpu.pipeline_mode<synchronous>, transform_indices = @transform_2, window_bounds = array<i64: 1, 256>}, {pipeline_mode = #tpu.pipeline_mode<synchronous>, transform_indices = @transform_3, window_bounds = array<i64: 256, 128>}, {pipeline_mode = #tpu.pipeline_mode<synchronous>, transform_indices = @transform_4, window_bounds = array<i64: 1, 128>}, {transform_indices = @transform_5, window_bounds = array<i64: 8, 128>}]} {
    %c0_i32 = arith.constant 0 : i32
    %0 = arith.cmpi eq, %arg1, %c0_i32 : i32
    %1 = arith.extui %0 : i1 to i32
    %c0_i32_0 = arith.constant 0 : i32
    %2 = arith.cmpi ne, %1, %c0_i32_0 : i32
    scf.if %2 {
      %c0_10 = arith.constant 0 : index
      %c0_11 = arith.constant 0 : index
      %13 = vector.load %arg4[%c0_10, %c0_11] : memref<1x256xf32, #tpu.memory_space<vmem>>, vector<1x256xf32>
      %14 = vector.shape_cast %13 : vector<1x256xf32> to vector<1x256xf32>
      %15 = vector.broadcast %14 : vector<1x256xf32> to vector<8x256xf32>
      %c0_12 = arith.constant 0 : index
      %c0_13 = arith.constant 0 : index
      %16 = vector.load %arg8[%c0_12, %c0_13] : memref<8x256xf32, #tpu.memory_space<vmem>>, vector<8x256xf32>
      tpu.vector_store %arg8[%c0_12, %c0_13], %15 {strides = array<i32>} : memref<8x256xf32, #tpu.memory_space<vmem>>, vector<8x256xf32>,
    } else {
    }
    %c0 = arith.constant 0 : index
    %c0_1 = arith.constant 0 : index
    %3 = vector.load %arg8[%c0, %c0_1] : memref<8x256xf32, #tpu.memory_space<vmem>>, vector<8x256xf32>
    %c0_2 = arith.constant 0 : index
    %c0_3 = arith.constant 0 : index
    %4 = vector.load %arg2[%c0_2, %c0_3] : memref<8x128xf32, #tpu.memory_space<vmem>>, vector<8x128xf32>
    %5 = arith.truncf %4 : vector<8x128xf32> to vector<8x128xbf16>
    %c0_4 = arith.constant 0 : index
    %c0_5 = arith.constant 0 : index
    %6 = vector.load %arg3[%c0_4, %c0_5] : memref<128x256xbf16, #tpu.memory_space<vmem>>, vector<128x256xbf16>
    %cst = arith.constant dense<0.000000e+00> : vector<8x256xf32>
    %7 = tpu.matmul %5, %6, %cst {dimension_numbers = #tpu.dot_dimension_numbers<[1], [0], [0], [1], [0, 0, 1, 1], [], []>} : vector<8x128xbf16>, vector<128x256xbf16>, vector<8x256xf32> -> vector<8x256xf32>
    %8 = arith.addf %3, %7 : vector<8x256xf32>
    %c0_6 = arith.constant 0 : index
    %c0_7 = arith.constant 0 : index
    %9 = vector.load %arg8[%c0_6, %c0_7] : memref<8x256xf32, #tpu.memory_space<vmem>>, vector<8x256xf32>
    tpu.vector_store %arg8[%c0_6, %c0_7], %8 {strides = array<i32>} : memref<8x256xf32, #tpu.memory_space<vmem>>, vector<8x256xf32>,
    %c0_i32_8 = arith.constant 0 : i32
    %10 = arith.cmpi eq, %arg1, %c0_i32_8 : i32
    %11 = arith.extui %10 : i1 to i32
    %c0_i32_9 = arith.constant 0 : i32
    %12 = arith.cmpi ne, %11, %c0_i32_9 : i32
    scf.if %12 {
      %c0_10 = arith.constant 0 : index
      %c0_11 = arith.constant 0 : index
      %13 = vector.load %arg8[%c0_10, %c0_11] : memref<8x256xf32, #tpu.memory_space<vmem>>, vector<8x256xf32>
      %cst_12 = arith.constant 0.000000e+00 : f32
      %14 = vector.broadcast %cst_12 : f32 to vector<8x256xf32>
      %15 = arith.maximumf %13, %14 : vector<8x256xf32>
      %16 = arith.truncf %15 : vector<8x256xf32> to vector<8x256xbf16>
      %c0_13 = arith.constant 0 : index
      %c0_14 = arith.constant 0 : index
      %17 = vector.load %arg5[%c0_13, %c0_14] : memref<256x128xbf16, #tpu.memory_space<vmem>>, vector<256x128xbf16>
      %cst_15 = arith.constant dense<0.000000e+00> : vector<8x128xf32>
      %18 = tpu.matmul %16, %17, %cst_15 {dimension_numbers = #tpu.dot_dimension_numbers<[1], [0], [0], [1], [0, 0, 1, 1], [], []>} : vector<8x256xbf16>, vector<256x128xbf16>, vector<8x128xf32> -> vector<8x128xf32>
      %c0_16 = arith.constant 0 : index
      %c0_17 = arith.constant 0 : index
      %19 = vector.load %arg6[%c0_16, %c0_17] : memref<1x128xf32, #tpu.memory_space<vmem>>, vector<1x128xf32>
      %20 = vector.broadcast %19 : vector<1x128xf32> to vector<8x128xf32>
      %21 = arith.addf %18, %20 : vector<8x128xf32>
      %c0_18 = arith.constant 0 : index
      %c0_19 = arith.constant 0 : index
      %22 = vector.load %arg7[%c0_18, %c0_19] : memref<8x128xf32, #tpu.memory_space<vmem>>, vector<8x128xf32>
      tpu.vector_store %arg7[%c0_18, %c0_19], %21 {strides = array<i32>} : memref<8x128xf32, #tpu.memory_space<vmem>>, vector<8x128xf32>,
    } else {
    }
    return
  }
  func.func @transform_0(%arg0: i32, %arg1: i32) -> (i32, i32) {
    %c0_i32 = arith.constant 0 : i32
    return %arg0, %arg1 : i32, i32
  }
  func.func @transform_1(%arg0: i32, %arg1: i32) -> (i32, i32) {
    %c0_i32 = arith.constant 0 : i32
    %c0_i32_0 = arith.constant 0 : i32
    return %arg1, %c0_i32 : i32, i32
  }
  func.func @transform_2(%arg0: i32, %arg1: i32) -> (i32, i32) {
    %c0_i32 = arith.constant 0 : i32
    %c0_i32_0 = arith.constant 0 : i32
    %c0_i32_1 = arith.constant 0 : i32
    return %c0_i32, %c0_i32_0 : i32, i32
  }
  func.func @transform_3(%arg0: i32, %arg1: i32) -> (i32, i32) {
    %c0_i32 = arith.constant 0 : i32
    %c0_i32_0 = arith.constant 0 : i32
    %c0_i32_1 = arith.constant 0 : i32
    return %c0_i32, %c0_i32_0 : i32, i32
  }
  func.func @transform_4(%arg0: i32, %arg1: i32) -> (i32, i32) {
    %c0_i32 = arith.constant 0 : i32
    %c0_i32_0 = arith.constant 0 : i32
    %c0_i32_1 = arith.constant 0 : i32
    return %c0_i32, %c0_i32_0 : i32, i32
  }
  func.func @transform_5(%arg0: i32, %arg1: i32) -> (i32, i32) {
    %c0_i32 = arith.constant 0 : i32
    %c0_i32_0 = arith.constant 0 : i32
    return %arg0, %c0_i32 : i32, i32
  }
}

module attributes {stable_mosaic.version = 11 : i64} {
  func.func @classifier_kernel(%arg0: i32, %arg1: i32, %arg2: memref<8x128xf32, #tpu.memory_space<vmem>>, %arg3: memref<128x256xbf16, #tpu.memory_space<vmem>>, %arg4: memref<1x256xf32, #tpu.memory_space<vmem>>, %arg5: memref<256x128xbf16, #tpu.memory_space<vmem>>, %arg6: memref<1x128xf32, #tpu.memory_space<vmem>>, %arg7: memref<8x128xf32, #tpu.memory_space<vmem>>, %arg8: memref<8x256xf32, #tpu.memory_space<vmem>>) attributes {dimension_semantics = [#tpu.dimension_semantics<parallel>, #tpu.dimension_semantics<arbitrary>], iteration_bounds = array<i64: 1, 1>, scalar_prefetch = 0 : i64, scratch_operands = 1 : i64, tpu.core_type = #tpu.core_type<tc>, window_params = [{transform_indices = @transform_0, window_bounds = array<i64: 8, 128>}, {transform_indices = @transform_1, window_bounds = array<i64: 128, 256>}, {pipeline_mode = #tpu.pipeline_mode<synchronous>, transform_indices = @transform_2, window_bounds = array<i64: 1, 256>}, {pipeline_mode = #tpu.pipeline_mode<synchronous>, transform_indices = @transform_3, window_bounds = array<i64: 256, 128>}, {pipeline_mode = #tpu.pipeline_mode<synchronous>, transform_indices = @transform_4, window_bounds = array<i64: 1, 128>}, {transform_indices = @transform_5, window_bounds = array<i64: 8, 128>}]} {
    %c0_i32 = arith.constant 0 : i32
    %0 = arith.cmpi eq, %arg1, %c0_i32 : i32
    %1 = arith.extui %0 : i1 to i32
    %c0_i32_0 = arith.constant 0 : i32
    %2 = arith.cmpi ne, %1, %c0_i32_0 : i32
    scf.if %2 {
      %c0_10 = arith.constant 0 : index
      %c0_11 = arith.constant 0 : index
      %13 = vector.load %arg4[%c0_10, %c0_11] : memref<1x256xf32, #tpu.memory_space<vmem>>, vector<1x256xf32>
      %14 = vector.shape_cast %13 : vector<1x256xf32> to vector<1x256xf32>
      %15 = vector.broadcast %14 : vector<1x256xf32> to vector<8x256xf32>
      %c0_12 = arith.constant 0 : index
      %c0_13 = arith.constant 0 : index
      %16 = vector.load %arg8[%c0_12, %c0_13] : memref<8x256xf32, #tpu.memory_space<vmem>>, vector<8x256xf32>
      tpu.vector_store %arg8[%c0_12, %c0_13], %15 {strides = array<i32>} : memref<8x256xf32, #tpu.memory_space<vmem>>, vector<8x256xf32>,
    } else {
    }
    %c0 = arith.constant 0 : index
    %c0_1 = arith.constant 0 : index
    %3 = vector.load %arg8[%c0, %c0_1] : memref<8x256xf32, #tpu.memory_space<vmem>>, vector<8x256xf32>
    %c0_2 = arith.constant 0 : index
    %c0_3 = arith.constant 0 : index
    %4 = vector.load %arg2[%c0_2, %c0_3] : memref<8x128xf32, #tpu.memory_space<vmem>>, vector<8x128xf32>
    %5 = arith.truncf %4 : vector<8x128xf32> to vector<8x128xbf16>
    %c0_4 = arith.constant 0 : index
    %c0_5 = arith.constant 0 : index
    %6 = vector.load %arg3[%c0_4, %c0_5] : memref<128x256xbf16, #tpu.memory_space<vmem>>, vector<128x256xbf16>
    %cst = arith.constant dense<0.000000e+00> : vector<8x256xf32>
    %7 = tpu.matmul %5, %6, %cst {dimension_numbers = #tpu.dot_dimension_numbers<[1], [0], [0], [1], [0, 0, 1, 1], [], []>} : vector<8x128xbf16>, vector<128x256xbf16>, vector<8x256xf32> -> vector<8x256xf32>
    %8 = arith.addf %3, %7 : vector<8x256xf32>
    %c0_6 = arith.constant 0 : index
    %c0_7 = arith.constant 0 : index
    %9 = vector.load %arg8[%c0_6, %c0_7] : memref<8x256xf32, #tpu.memory_space<vmem>>, vector<8x256xf32>
    tpu.vector_store %arg8[%c0_6, %c0_7], %8 {strides = array<i32>} : memref<8x256xf32, #tpu.memory_space<vmem>>, vector<8x256xf32>,
    %c0_i32_8 = arith.constant 0 : i32
    %10 = arith.cmpi eq, %arg1, %c0_i32_8 : i32
    %11 = arith.extui %10 : i1 to i32
    %c0_i32_9 = arith.constant 0 : i32
    %12 = arith.cmpi ne, %11, %c0_i32_9 : i32
    scf.if %12 {
      %c0_10 = arith.constant 0 : index
      %c0_11 = arith.constant 0 : index
      %13 = vector.load %arg8[%c0_10, %c0_11] : memref<8x256xf32, #tpu.memory_space<vmem>>, vector<8x256xf32>
      %cst_12 = arith.constant 0.000000e+00 : f32
      %14 = vector.broadcast %cst_12 : f32 to vector<8x256xf32>
      %15 = arith.maximumf %13, %14 : vector<8x256xf32>
      %16 = arith.truncf %15 : vector<8x256xf32> to vector<8x256xbf16>
      %c0_13 = arith.constant 0 : index
      %c0_14 = arith.constant 0 : index
      %17 = vector.load %arg5[%c0_13, %c0_14] : memref<256x128xbf16, #tpu.memory_space<vmem>>, vector<256x128xbf16>
      %cst_15 = arith.constant dense<0.000000e+00> : vector<8x128xf32>
      %18 = tpu.matmul %16, %17, %cst_15 {dimension_numbers = #tpu.dot_dimension_numbers<[1], [0], [0], [1], [0, 0, 1, 1], [], []>} : vector<8x256xbf16>, vector<256x128xbf16>, vector<8x128xf32> -> vector<8x128xf32>
      %c0_16 = arith.constant 0 : index
      %c0_17 = arith.constant 0 : index
      %19 = vector.load %arg6[%c0_16, %c0_17] : memref<1x128xf32, #tpu.memory_space<vmem>>, vector<1x128xf32>
      %20 = vector.broadcast %19 : vector<1x128xf32> to vector<8x128xf32>
      %21 = arith.addf %18, %20 : vector<8x128xf32>
      %c0_18 = arith.constant 0 : index
      %c0_19 = arith.constant 0 : index
      %22 = vector.load %arg7[%c0_18, %c0_19] : memref<8x128xf32, #tpu.memory_space<vmem>>, vector<8x128xf32>
      tpu.vector_store %arg7[%c0_18, %c0_19], %21 {strides = array<i32>} : memref<8x128xf32, #tpu.memory_space<vmem>>, vector<8x128xf32>,
    } else {
    }
    return
  }
  func.func @transform_0(%arg0: i32, %arg1: i32) -> (i32, i32) {
    %c0_i32 = arith.constant 0 : i32
    return %arg0, %arg1 : i32, i32
  }
  func.func @transform_1(%arg0: i32, %arg1: i32) -> (i32, i32) {
    %c0_i32 = arith.constant 0 : i32
    %c0_i32_0 = arith.constant 0 : i32
    return %arg1, %c0_i32 : i32, i32
  }
  func.func @transform_2(%arg0: i32, %arg1: i32) -> (i32, i32) {
    %c0_i32 = arith.constant 0 : i32
    %c0_i32_0 = arith.constant 0 : i32
    %c0_i32_1 = arith.constant 0 : i32
    return %c0_i32, %c0_i32_0 : i32, i32
  }
  func.func @transform_3(%arg0: i32, %arg1: i32) -> (i32, i32) {
    %c0_i32 = arith.constant 0 : i32
    %c0_i32_0 = arith.constant 0 : i32
    %c0_i32_1 = arith.constant 0 : i32
    return %c0_i32, %c0_i32_0 : i32, i32
  }
  func.func @transform_4(%arg0: i32, %arg1: i32) -> (i32, i32) {
    %c0_i32 = arith.constant 0 : i32
    %c0_i32_0 = arith.constant 0 : i32
    %c0_i32_1 = arith.constant 0 : i32
    return %c0_i32, %c0_i32_0 : i32, i32
  }
  func.func @transform_5(%arg0: i32, %arg1: i32) -> (i32, i32) {
    %c0_i32 = arith.constant 0 : i32
    %c0_i32_0 = arith.constant 0 : i32
    return %arg0, %c0_i32 : i32, i32
  }
}

</mosaic_0001>

<bundles_post_ra>
// kernel: tpu_custom_call.1
= control target key start
LH: loop header
LB: loop body
LE: loop exit
PB: predicated region body
PF: predicated region fallthrough
CT: control target
= control target key end

     0   :  { %10 = vsyncpa [#allocation4], 0  ;;  %s808_s0 = inlined_call_operand.hbm [shape: f32[8,128], index: 0, kind: input, shape index: {}]   ;;  %s809_s1 = inlined_call_operand.hbm [shape: bf16[128,256], index: 1, kind: input, shape index: {}]   ;;  %s810_s2 = inlined_call_operand.hbm [shape: f32[1,256], index: 2, kind: input, shape index: {}]   ;;  %s811_s3 = inlined_call_operand.hbm [shape: bf16[256,128], index: 3, kind: input, shape index: {}]   ;;  %s812_s4 = inlined_call_operand.hbm [shape: f32[1,128], index: 4, kind: input, shape index: {}]   ;;  %s813_s5 = inlined_call_operand.hbm [shape: f32[8,128], index: 5, kind: output, shape index: {}]  }
   0x1   :  { %11 = vsyncpa [#allocation7], 0 }
   0x2   :  { %12 = vsyncpa [#allocation10], 0 }
   0x3   :  { %13 = vsyncpa [#allocation5], 0  ;;  %s695_s18 = smov [#allocation6]   ;;  %s555_s22 = scalar_lea.hbm %s809_s1, 2048 }
   0x4   :  { %s29_s19 = sshll.u32 %s695_s18, 4  ;;  %p556_p0 = scmp.ne.s32.totalorder %s809_s1, %s555_s22  ;;  %s30_s19 = int_to_ptr.vmem [resolvable:$true] %s29_s19 }
   0x5   :  { %p559_p1 = scmp.lt.u32.totalorder %s555_s22, %s809_s1 }
   0x7   :  { %p561_p2 = pnand %p559_p1, %p556_p0 }
   0x9   :  { %564 = shalt.err (!%p561_p2)
}
   0xa   :  { %s565_s27 = scalar_lea.vmem %s30_s19, 2048  ;;  %p570_p4 = scmp.lt.s32.totalorder %s30_s19, %s30_s19 }
   0xb   :  { %p566_p3 = scmp.ne.s32.totalorder %s30_s19, %s565_s27  ;;  %p571_p5 = scmp.lt.s32.totalorder %s565_s27, %s565_s27 }
   0xd   :  { %p572_p6 = por %p571_p5, %p570_p4 }
   0xf   :  { %p573_p7 = pnand %p572_p6, %p566_p3 }
  0x11   :  { %576 = shalt.err (!%p573_p7)
}
  0x12   :  { %s696_s28 = smov 128   ;;  %s697_s29 = smov 8  }
  0x13   :  { %35 = dma.hbm_to_vmem [thread:$0]  %s809_s1, 2048, %s30_s19, [#allocation7], %s696_s28, %s696_s28, %s697_s29  }
  0x14   :  { %s698_s7 = smov [#allocation9]   ;;  %s577_s11 = scalar_lea.hbm %s811_s3, 2048 }
  0x15   :  { %s51_s8 = sshll.u32 %s698_s7, 4  ;;  %p578_p8 = scmp.ne.s32.totalorder %s811_s3, %s577_s11  ;;  %s52_s8 = int_to_ptr.vmem [resolvable:$true] %s51_s8 }
  0x16   :  { %p581_p9 = scmp.lt.u32.totalorder %s577_s11, %s811_s3 }
  0x18   :  { %p583_p10 = pnand %p581_p9, %p578_p8 }
  0x1a   :  { %586 = shalt.err (!%p583_p10)
}
  0x1b   :  { %s587_s16 = scalar_lea.vmem %s52_s8, 2048  ;;  %p592_p12 = scmp.lt.s32.totalorder %s52_s8, %s52_s8 }
  0x1c   :  { %p588_p11 = scmp.ne.s32.totalorder %s52_s8, %s587_s16  ;;  %p593_p13 = scmp.lt.s32.totalorder %s587_s16, %s587_s16 }
  0x1e   :  { %p594_p0 = por %p593_p13, %p592_p12 }
  0x20   :  { %p595_p1 = pnand %p594_p0, %p588_p11 }
  0x22   :  { %598 = shalt.err (!%p595_p1)
}
  0x23   :  { %s699_s1 = smov 64   ;;  %s700_s17 = smov 4  }
  0x24   :  { %57 = dma.hbm_to_vmem [thread:$0]  %s811_s3, 2048, %s52_s8, [#allocation10], %s699_s1, %s699_s1, %s700_s17  }
  0x25   :  { %s701_s20 = smov [#allocation3]   ;;  %s702_s22 = smov [#allocation8]  }
  0x26   :  { %s20_s21 = sshll.u32 %s701_s20, 4  ;;  %s42_s23 = sshll.u32 %s702_s22, 4  ;;  %s21_s21 = int_to_ptr.vmem [resolvable:$true] %s20_s21  ;;  %s43_s23 = int_to_ptr.vmem [resolvable:$true] %s42_s23 }
  0x27   :  { %s599_s26 = scalar_lea.hbm %s808_s0, 128 }
  0x28   :  { %p600_p2 = scmp.ne.s32.totalorder %s808_s0, %s599_s26  ;;  %p603_p3 = scmp.lt.u32.totalorder %s599_s26, %s808_s0 }
  0x2a   :  { %p605_p4 = pnand %p603_p3, %p600_p2 }
  0x2c   :  { %608 = shalt.err (!%p605_p4)
}
  0x2d   :  { %s609_s3 = scalar_lea.vmem %s21_s21, 128  ;;  %p614_p6 = scmp.lt.s32.totalorder %s21_s21, %s21_s21 }
  0x2e   :  { %p610_p5 = scmp.ne.s32.totalorder %s21_s21, %s609_s3  ;;  %p615_p7 = scmp.lt.s32.totalorder %s609_s3, %s609_s3 }
  0x30   :  { %p616_p8 = por %p615_p7, %p614_p6 }
  0x32   :  { %p617_p9 = pnand %p616_p8, %p610_p5 }
  0x34   :  { %620 = shalt.err (!%p617_p9)
}
  0x35   :  { %23 = dma.hbm_to_vmem [thread:$0]  %s808_s0, 128, %s21_s21, [#allocation4]  }
  0x36   :  { %s621_s10 = scalar_lea.hbm %s810_s2, 32 }
  0x37   :  { %p622_p10 = scmp.ne.s32.totalorder %s810_s2, %s621_s10  ;;  %p625_p11 = scmp.lt.u32.totalorder %s621_s10, %s810_s2 }
  0x39   :  { %p627_p12 = pnand %p625_p11, %p622_p10 }
  0x3b   :  { %630 = shalt.err (!%p627_p12)
}
  0x3c   :  { %s631_s15 = scalar_lea.vmem %s43_s23, 32  ;;  %p636_p0 = scmp.lt.s32.totalorder %s43_s23, %s43_s23 }
  0x3d   :  { %p632_p13 = scmp.ne.s32.totalorder %s43_s23, %s631_s15  ;;  %p637_p1 = scmp.lt.s32.totalorder %s631_s15, %s631_s15 }
  0x3f   :  { %p638_p2 = por %p637_p1, %p636_p0 }
  0x41   :  { %p639_p3 = pnand %p638_p2, %p632_p13 }
  0x43   :  { %642 = shalt.err (!%p639_p3)
}
  0x44   :  { %45 = dma.hbm_to_vmem [thread:$0]  %s810_s2, 32, %s43_s23, [#allocation7]  }
  0x45   :  { %s703_s1 = smov [#allocation11]   ;;  %s643_s20 = scalar_lea.hbm %s812_s4, 16 }
  0x46   :  { %s64_s17 = sshll.u32 %s703_s1, 4  ;;  %p644_p4 = scmp.ne.s32.totalorder %s812_s4, %s643_s20  ;;  %s65_s17 = int_to_ptr.vmem [resolvable:$true] %s64_s17 }
  0x47   :  { %p647_p5 = scmp.lt.u32.totalorder %s643_s20, %s812_s4 }
  0x49   :  { %p649_p6 = pnand %p647_p5, %p644_p4 }
  0x4b   :  { %652 = shalt.err (!%p649_p6)
}
  0x4c   :  { %s653_s26 = scalar_lea.vmem %s65_s17, 16  ;;  %s657_s2 = scalar_lea.vmem %s65_s17, 32 }
  0x4d   :  { %p654_p7 = scmp.ne.s32.totalorder %s65_s17, %s653_s26  ;;  %p658_p8 = scmp.lt.s32.totalorder %s65_s17, %s65_s17 }
  0x4e   :  { %p659_p9 = scmp.lt.s32.totalorder %s657_s2, %s653_s26 }
  0x50   :  { %p660_p10 = por %p659_p9, %p658_p8 }
  0x52   :  { %p661_p11 = pnand %p660_p10, %p654_p7 }
  0x54   :  { %664 = shalt.err (!%p661_p11)
}
  0x55   :  { %67 = dma.hbm_to_vmem [thread:$0]  %s812_s4, 16, %s65_s17, [#allocation10]  }
  0x56   :  { %687 = dma.done.wait [#allocation4], 128  }
  0x57   :  { %688 = vsyncadd [#allocation4], 4294967168 }
  0x58   :  { %689 = dma.done.wait [#allocation7], 2080  }
  0x59   :  { %690 = vsyncadd [#allocation7], 4294965216 }
  0x5a   :  { %691 = dma.done.wait [#allocation10], 2064  }
  0x5b   :  { %692 = vsyncadd [#allocation10], 4294965232  ;;  %v704_v0 = vmov 0   ;;  %v515_v1 = vld [vmem:[#allocation6 + $0x4] ss:$8 sps:$4 sm:$0xff]   ;;  %v543_v15 = vld [vmem:[#allocation9 + $0x50] sm:$0xff]   ;;  %v90_v35 = vlaneseq }
  0x5c   :  { %234 = vmatprep.mubr.bf16.mxu0 %v704_v0  ;;  %v517_v2 = vld [vmem:[#allocation6] ss:$8 sps:$4 sm:$0xff]   ;;  %202 = vmatprep.subr.bf16.mxu0 %v515_v1  ;;  %v518_v3 = vld [vmem:[#allocation6 + $0x14] ss:$8 sps:$4 sm:$0xff]   ;;  %v520_v4 = vld [vmem:[#allocation6 + $0x10] ss:$8 sps:$4 sm:$0xff]  }
  0x5d   :  { %203 = vmatpush1.bf16.msra.mxu0 %v517_v2  ;;  %v521_v5 = vld [vmem:[#allocation6 + $0x24] ss:$8 sps:$4 sm:$0xff]   ;;  %v523_v6 = vld [vmem:[#allocation6 + $0x20] ss:$8 sps:$4 sm:$0xff]   ;;  %v524_v7 = vld [vmem:[#allocation6 + $0x34] ss:$8 sps:$4 sm:$0xff]  }
  0x5e   :  { %204 = vmatprep.subr.bf16.mxu0 %v518_v3  ;;  %v526_v8 = vld [vmem:[#allocation6 + $0x30] ss:$8 sps:$4 sm:$0xff]   ;;  %v527_v9 = vld [vmem:[#allocation6 + $0x44] ss:$8 sps:$4 sm:$0xff]   ;;  %v529_v12 = vld [vmem:[#allocation6 + $0x40] ss:$8 sps:$4 sm:$0xff]  }
  0x5f   :  { %v539_v10 = vld [vmem:[#allocation9 + $0x40] sm:$0xff]   ;;  %v541_v13 = vld [vmem:[#allocation9 + $0x48] sm:$0xff]   ;;  %v530_v16 = vld [vmem:[#allocation6 + $0x54] ss:$8 sps:$4 sm:$0xff]   ;;  %v91_v36 = vshrl.u32 %v90_v35, 7  ;;  %s705_s4 = smov [#allocation12]  }
  0x60   :  { %v540_v11 = vld [vmem:[#allocation9] sm:$0xff]   ;;  %482 = vmatprep.subr.bf16.mxu1 %v539_v10  ;;  %v542_v14 = vld [vmem:[#allocation9 + $0x8] sm:$0xff]   ;;  %v544_v18 = vld [vmem:[#allocation9 + $0x10] sm:$0xff]   ;;  %s438_s28 = sshll.u32 %s705_s4, 4  ;;  %s439_s28 = int_to_ptr.vmem [resolvable:$true] %s438_s28 }
  0x61   :  { %205 = vmatpush1.bf16.msra.mxu0 %v520_v4  ;;  %483 = vmatpush3.bf16.msra.mxu1 %v540_v11  ;;  %v532_v17 = vld [vmem:[#allocation6 + $0x50] ss:$8 sps:$4 sm:$0xff]   ;;  %v533_v20 = vld [vmem:[#allocation6 + $0x64] ss:$8 sps:$4 sm:$0xff]   ;;  %v535_v21 = vld [vmem:[#allocation6 + $0x60] ss:$8 sps:$4 sm:$0xff]   ;;  %p670_p13 = scmp.lt.s32.totalorder %s439_s28, %s439_s28 }
  0x62   :  { %206 = vmatprep.subr.bf16.mxu0 %v521_v5  ;;  %484 = vmatprep.subr.bf16.mxu1 %v541_v13  ;;  %v545_v19 = vld [vmem:[#allocation9 + $0x58] sm:$0xff]   ;;  %v547_v24 = vld [vmem:[#allocation9 + $0x60] sm:$0xff]   ;;  %v549_v28 = vld [vmem:[#allocation9 + $0x68] sm:$0xff]   ;;  %v92_v37 = vsub.s32 0, %v91_v36  ;;  %v96_v39 = vsub.s32 1, %v91_v36  ;;  %s665_s29 = scalar_lea.vmem %s439_s28, 128 }
  0x63   :  { %v536_v22 = vld [vmem:[#allocation6 + $0x74] ss:$8 sps:$4 sm:$0xff]   ;;  %v548_v25 = vld [vmem:[#allocation9 + $0x20] sm:$0xff]   ;;  %v538_v26 = vld [vmem:[#allocation6 + $0x70] ss:$8 sps:$4 sm:$0xff]   ;;  %p666_p12 = scmp.ne.s32.totalorder %s439_s28, %s665_s29  ;;  %p671_p0 = scmp.lt.s32.totalorder %s665_s29, %s665_s29 }
  0x64   :  { %v546_v23 = vld [vmem:[#allocation9 + $0x18] sm:$0xff]   ;;  %v550_v30 = vld [vmem:[#allocation9 + $0x28] sm:$0xff]   ;;  %v551_v31 = vld [vmem:[#allocation9 + $0x70] sm:$0xff]  }
  0x65   :  { %207 = vmatpush1.bf16.msra.mxu0 %v523_v6  ;;  %485 = vmatpush3.bf16.msra.mxu1 %v542_v14  ;;  %v104_v27 = vld [vmem:[#allocation3] sm:$0xff]  ;;  %v88_v38 = vld [vmem:[#allocation8] sm:$0x3]  ;;  %v465_v53 = vld [vmem:[#allocation11] ss:$0 sm:$0xff]  ;;  %p672_p1 = por %p671_p0, %p670_p13 }
  0x66   :  { %208 = vmatprep.subr.bf16.mxu0 %v524_v7  ;;  %486 = vmatprep.subr.bf16.mxu1 %v543_v15  ;;  %v105_v29 = vpack.c.bf16 %v104_v27, %v104_v27  ;;  %v552_v32 = vld [vmem:[#allocation9 + $0x30] sm:$0xff]   ;;  %v553_v33 = vld [vmem:[#allocation9 + $0x78] sm:$0xff]   ;;  %v93_v40 = vrot.slane %v88_v38, %v92_v37  ;;  %v97_v41 = vrot.slane %v88_v38, %v96_v39 }
  0x67   :  { %v554_v34 = vld [vmem:[#allocation9 + $0x38] sm:$0xff]   ;;  %p673_p2 = pnand %p672_p1, %p666_p12 }
  0x69   :  { %209 = vmatpush1.bf16.msra.mxu0 %v526_v8  ;;  %487 = vmatpush3.bf16.msra.mxu1 %v544_v18 }
  0x6a   :  { %210 = vmatprep.subr.bf16.mxu0 %v527_v9  ;;  %488 = vmatprep.subr.bf16.mxu1 %v545_v19 }
  0x6d   :  { %211 = vmatpush1.bf16.msra.mxu0 %v529_v12  ;;  %489 = vmatpush3.bf16.msra.mxu1 %v546_v23 }
  0x6e   :  { %212 = vmatprep.subr.bf16.mxu0 %v530_v16  ;;  %490 = vmatprep.subr.bf16.mxu1 %v547_v24 }
  0x71   :  { %213 = vmatpush1.bf16.msra.mxu0 %v532_v17  ;;  %491 = vmatpush3.bf16.msra.mxu1 %v548_v25 }
  0x72   :  { %214 = vmatprep.subr.bf16.mxu0 %v533_v20  ;;  %492 = vmatprep.subr.bf16.mxu1 %v549_v28 }
  0x75   :  { %215 = vmatpush1.bf16.msra.mxu0 %v535_v21  ;;  %493 = vmatpush3.bf16.msra.mxu1 %v550_v30 }
  0x76   :  { %216 = vmatprep.subr.bf16.mxu0 %v536_v22  ;;  %494 = vmatprep.subr.bf16.mxu1 %v551_v31 }
  0x79   :  { %217 = vmatpush1.bf16.msra.mxu0 %v538_v26  ;;  %495 = vmatpush3.bf16.msra.mxu1 %v552_v32 }
  0x7a   :  { %496 = vmatprep.subr.bf16.mxu1 %v553_v33 }
  0x7c   :  { %235 = vmatmul.mubr.bf16.vlgmr.msra.gmra.mrb[0].mxu0 %v105_v29 }
  0x7d   :  { %497 = vmatpush3.bf16.msra.mxu1 %v554_v34 }
 0x14f   :  { %v236_v42 = vpop.f32.mrb[0].mxu0 }
 0x150   :  { %v243_v43 = vadd.f32 %v236_v42, %v93_v40  ;;  %v238_v44 = vpop.f32.mrb[1].mxu0 }
 0x151   :  { %v244_v45 = vadd.f32 %v238_v44, %v97_v41  ;;  %v240_v46 = vpop.f32.mrb[2].mxu0 }
 0x152   :  { %v252_v47 = vmax.f32 %v243_v43, 0.0  ;;  %v241_v48 = vpop.f32.mrb[3].mxu0 }
 0x153   :  { %v253_v49 = vmax.f32 %v244_v45, 0.0 }
 0x154   :  { %v254_v51 = vpack.c.bf16 %v252_v47, %v252_v47 }
 0x155   :  { %v255_v50 = vpack.c.bf16 %v253_v49, %v253_v49 }
 0x157   :  { %423 = vmatprep.mubr.bf16.mxu1 %v255_v50 }
 0x158   :  { %424 = vmatmul.mubr.bf16.vlgmr.msra.gmra.mrb[0].mxu1 %v254_v51 }
 0x22b   :  { %v498_v52 = vpop.f32.mrb[0].mxu1 }
 0x22c   :  { %v499_v54 = vpop.f32.mrb[1].mxu1 }
 0x22d   :  { %v500_v55 = vadd.f32 %v499_v54, %v498_v52  ;;  %v501_v56 = vpop.f32.mrb[2].mxu1 }
 0x22e   :  { %v502_v57 = vpop.f32.mrb[3].mxu1 }
 0x22f   :  { %v426_v58 = vadd.f32 %v500_v55, %v465_v53 }
 0x231   :  { %431 = vst [vmem:[#allocation12] sm:$0xff] %v426_v58 }
 0x232   :  { %676 = shalt.err (!%p673_p2)
}
 0x233   :  { %s677_s6 = scalar_lea.hbm %s813_s5, 128 }
 0x234   :  { %p678_p3 = scmp.ne.s32.totalorder %s813_s5, %s677_s6  ;;  %p681_p4 = scmp.lt.u32.totalorder %s677_s6, %s813_s5 }
 0x236   :  { %p683_p5 = pnand %p681_p4, %p678_p3 }
 0x238   :  { %686 = shalt.err (!%p683_p5)
}
 0x239   :  { %441 = dma.vmem_to_hbm [thread:$0]  %s439_s28, 128, %s813_s5, [#allocation5]  }
 0x23a   :  { %693 = dma.done.wait [#allocation5], 128  }
 0x23b   :  { %694 = vsyncadd [#allocation5], 4294967168 }
 0x23c   :  { %445 = vsyncpa [#allocation4], 1 }
 0x23d   :  { %446 = vsyncpa [#allocation7], 1 }
 0x23e   :  { %447 = vsyncpa [#allocation10], 1 }
 0x23f   :  { %448 = vsyncpa [#allocation5], 1 }

// kernel: tpu_custom_call.1
= control target key start
LH: loop header
LB: loop body
LE: loop exit
PB: predicated region body
PF: predicated region fallthrough
CT: control target
= control target key end

     0   :  { %10 = vsyncpa [#allocation4], 0  ;;  %s808_s0 = inlined_call_operand.hbm [shape: f32[8,128], index: 0, kind: input, shape index: {}]   ;;  %s809_s1 = inlined_call_operand.hbm [shape: bf16[128,256], index: 1, kind: input, shape index: {}]   ;;  %s810_s2 = inlined_call_operand.hbm [shape: f32[1,256], index: 2, kind: input, shape index: {}]   ;;  %s811_s3 = inlined_call_operand.hbm [shape: bf16[256,128], index: 3, kind: input, shape index: {}]   ;;  %s812_s4 = inlined_call_operand.hbm [shape: f32[1,128], index: 4, kind: input, shape index: {}]   ;;  %s813_s5 = inlined_call_operand.hbm [shape: f32[8,128], index: 5, kind: output, shape index: {}]  }
   0x1   :  { %11 = vsyncpa [#allocation7], 0 }
   0x2   :  { %12 = vsyncpa [#allocation10], 0 }
   0x3   :  { %13 = vsyncpa [#allocation5], 0  ;;  %s695_s18 = smov [#allocation6]   ;;  %s555_s22 = scalar_lea.hbm %s809_s1, 2048 }
   0x4   :  { %s29_s19 = sshll.u32 %s695_s18, 4  ;;  %p556_p0 = scmp.ne.s32.totalorder %s809_s1, %s555_s22  ;;  %s30_s19 = int_to_ptr.vmem [resolvable:$true] %s29_s19 }
   0x5   :  { %p559_p1 = scmp.lt.u32.totalorder %s555_s22, %s809_s1 }
   0x7   :  { %p561_p2 = pnand %p559_p1, %p556_p0 }
   0x9   :  { %564 = shalt.err (!%p561_p2)
}
   0xa   :  { %s565_s27 = scalar_lea.vmem %s30_s19, 2048  ;;  %p570_p4 = scmp.lt.s32.totalorder %s30_s19, %s30_s19 }
   0xb   :  { %p566_p3 = scmp.ne.s32.totalorder %s30_s19, %s565_s27  ;;  %p571_p5 = scmp.lt.s32.totalorder %s565_s27, %s565_s27 }
   0xd   :  { %p572_p6 = por %p571_p5, %p570_p4 }
   0xf   :  { %p573_p7 = pnand %p572_p6, %p566_p3 }
  0x11   :  { %576 = shalt.err (!%p573_p7)
}
  0x12   :  { %s696_s28 = smov 128   ;;  %s697_s29 = smov 8  }
  0x13   :  { %35 = dma.hbm_to_vmem [thread:$0]  %s809_s1, 2048, %s30_s19, [#allocation7], %s696_s28, %s696_s28, %s697_s29  }
  0x14   :  { %s698_s7 = smov [#allocation9]   ;;  %s577_s11 = scalar_lea.hbm %s811_s3, 2048 }
  0x15   :  { %s51_s8 = sshll.u32 %s698_s7, 4  ;;  %p578_p8 = scmp.ne.s32.totalorder %s811_s3, %s577_s11  ;;  %s52_s8 = int_to_ptr.vmem [resolvable:$true] %s51_s8 }
  0x16   :  { %p581_p9 = scmp.lt.u32.totalorder %s577_s11, %s811_s3 }
  0x18   :  { %p583_p10 = pnand %p581_p9, %p578_p8 }
  0x1a   :  { %586 = shalt.err (!%p583_p10)
}
  0x1b   :  { %s587_s16 = scalar_lea.vmem %s52_s8, 2048  ;;  %p592_p12 = scmp.lt.s32.totalorder %s52_s8, %s52_s8 }
  0x1c   :  { %p588_p11 = scmp.ne.s32.totalorder %s52_s8, %s587_s16  ;;  %p593_p13 = scmp.lt.s32.totalorder %s587_s16, %s587_s16 }
  0x1e   :  { %p594_p0 = por %p593_p13, %p592_p12 }
  0x20   :  { %p595_p1 = pnand %p594_p0, %p588_p11 }
  0x22   :  { %598 = shalt.err (!%p595_p1)
}
  0x23   :  { %s699_s1 = smov 64   ;;  %s700_s17 = smov 4  }
  0x24   :  { %57 = dma.hbm_to_vmem [thread:$0]  %s811_s3, 2048, %s52_s8, [#allocation10], %s699_s1, %s699_s1, %s700_s17  }
  0x25   :  { %s701_s20 = smov [#allocation3]   ;;  %s702_s22 = smov [#allocation8]  }
  0x26   :  { %s20_s21 = sshll.u32 %s701_s20, 4  ;;  %s42_s23 = sshll.u32 %s702_s22, 4  ;;  %s21_s21 = int_to_ptr.vmem [resolvable:$true] %s20_s21  ;;  %s43_s23 = int_to_ptr.vmem [resolvable:$true] %s42_s23 }
  0x27   :  { %s599_s26 = scalar_lea.hbm %s808_s0, 128 }
  0x28   :  { %p600_p2 = scmp.ne.s32.totalorder %s808_s0, %s599_s26  ;;  %p603_p3 = scmp.lt.u32.totalorder %s599_s26, %s808_s0 }
  0x2a   :  { %p605_p4 = pnand %p603_p3, %p600_p2 }
  0x2c   :  { %608 = shalt.err (!%p605_p4)
}
  0x2d   :  { %s609_s3 = scalar_lea.vmem %s21_s21, 128  ;;  %p614_p6 = scmp.lt.s32.totalorder %s21_s21, %s21_s21 }
  0x2e   :  { %p610_p5 = scmp.ne.s32.totalorder %s21_s21, %s609_s3  ;;  %p615_p7 = scmp.lt.s32.totalorder %s609_s3, %s609_s3 }
  0x30   :  { %p616_p8 = por %p615_p7, %p614_p6 }
  0x32   :  { %p617_p9 = pnand %p616_p8, %p610_p5 }
  0x34   :  { %620 = shalt.err (!%p617_p9)
}
  0x35   :  { %23 = dma.hbm_to_vmem [thread:$0]  %s808_s0, 128, %s21_s21, [#allocation4]  }
  0x36   :  { %s621_s10 = scalar_lea.hbm %s810_s2, 32 }
  0x37   :  { %p622_p10 = scmp.ne.s32.totalorder %s810_s2, %s621_s10  ;;  %p625_p11 = scmp.lt.u32.totalorder %s621_s10, %s810_s2 }
  0x39   :  { %p627_p12 = pnand %p625_p11, %p622_p10 }
  0x3b   :  { %630 = shalt.err (!%p627_p12)
}
  0x3c   :  { %s631_s15 = scalar_lea.vmem %s43_s23, 32  ;;  %p636_p0 = scmp.lt.s32.totalorder %s43_s23, %s43_s23 }
  0x3d   :  { %p632_p13 = scmp.ne.s32.totalorder %s43_s23, %s631_s15  ;;  %p637_p1 = scmp.lt.s32.totalorder %s631_s15, %s631_s15 }
  0x3f   :  { %p638_p2 = por %p637_p1, %p636_p0 }
  0x41   :  { %p639_p3 = pnand %p638_p2, %p632_p13 }
  0x43   :  { %642 = shalt.err (!%p639_p3)
}
  0x44   :  { %45 = dma.hbm_to_vmem [thread:$0]  %s810_s2, 32, %s43_s23, [#allocation7]  }
  0x45   :  { %s703_s1 = smov [#allocation11]   ;;  %s643_s20 = scalar_lea.hbm %s812_s4, 16 }
  0x46   :  { %s64_s17 = sshll.u32 %s703_s1, 4  ;;  %p644_p4 = scmp.ne.s32.totalorder %s812_s4, %s643_s20  ;;  %s65_s17 = int_to_ptr.vmem [resolvable:$true] %s64_s17 }
  0x47   :  { %p647_p5 = scmp.lt.u32.totalorder %s643_s20, %s812_s4 }
  0x49   :  { %p649_p6 = pnand %p647_p5, %p644_p4 }
  0x4b   :  { %652 = shalt.err (!%p649_p6)
}
  0x4c   :  { %s653_s26 = scalar_lea.vmem %s65_s17, 16  ;;  %s657_s2 = scalar_lea.vmem %s65_s17, 32 }
  0x4d   :  { %p654_p7 = scmp.ne.s32.totalorder %s65_s17, %s653_s26  ;;  %p658_p8 = scmp.lt.s32.totalorder %s65_s17, %s65_s17 }
  0x4e   :  { %p659_p9 = scmp.lt.s32.totalorder %s657_s2, %s653_s26 }
  0x50   :  { %p660_p10 = por %p659_p9, %p658_p8 }
  0x52   :  { %p661_p11 = pnand %p660_p10, %p654_p7 }
  0x54   :  { %664 = shalt.err (!%p661_p11)
}
  0x55   :  { %67 = dma.hbm_to_vmem [thread:$0]  %s812_s4, 16, %s65_s17, [#allocation10]  }
  0x56   :  { %687 = dma.done.wait [#allocation4], 128  }
  0x57   :  { %688 = vsyncadd [#allocation4], 4294967168 }
  0x58   :  { %689 = dma.done.wait [#allocation7], 2080  }
  0x59   :  { %690 = vsyncadd [#allocation7], 4294965216 }
  0x5a   :  { %691 = dma.done.wait [#allocation10], 2064  }
  0x5b   :  { %692 = vsyncadd [#allocation10], 4294965232  ;;  %v704_v0 = vmov 0   ;;  %v515_v1 = vld [vmem:[#allocation6 + $0x4] ss:$8 sps:$4 sm:$0xff]   ;;  %v543_v15 = vld [vmem:[#allocation9 + $0x50] sm:$0xff]   ;;  %v90_v35 = vlaneseq }
  0x5c   :  { %234 = vmatprep.mubr.bf16.mxu0 %v704_v0  ;;  %v517_v2 = vld [vmem:[#allocation6] ss:$8 sps:$4 sm:$0xff]   ;;  %202 = vmatprep.subr.bf16.mxu0 %v515_v1  ;;  %v518_v3 = vld [vmem:[#allocation6 + $0x14] ss:$8 sps:$4 sm:$0xff]   ;;  %v520_v4 = vld [vmem:[#allocation6 + $0x10] ss:$8 sps:$4 sm:$0xff]  }
  0x5d   :  { %203 = vmatpush1.bf16.msra.mxu0 %v517_v2  ;;  %v521_v5 = vld [vmem:[#allocation6 + $0x24] ss:$8 sps:$4 sm:$0xff]   ;;  %v523_v6 = vld [vmem:[#allocation6 + $0x20] ss:$8 sps:$4 sm:$0xff]   ;;  %v524_v7 = vld [vmem:[#allocation6 + $0x34] ss:$8 sps:$4 sm:$0xff]  }
  0x5e   :  { %204 = vmatprep.subr.bf16.mxu0 %v518_v3  ;;  %v526_v8 = vld [vmem:[#allocation6 + $0x30] ss:$8 sps:$4 sm:$0xff]   ;;  %v527_v9 = vld [vmem:[#allocation6 + $0x44] ss:$8 sps:$4 sm:$0xff]   ;;  %v529_v12 = vld [vmem:[#allocation6 + $0x40] ss:$8 sps:$4 sm:$0xff]  }
  0x5f   :  { %v539_v10 = vld [vmem:[#allocation9 + $0x40] sm:$0xff]   ;;  %v541_v13 = vld [vmem:[#allocation9 + $0x48] sm:$0xff]   ;;  %v530_v16 = vld [vmem:[#allocation6 + $0x54] ss:$8 sps:$4 sm:$0xff]   ;;  %v91_v36 = vshrl.u32 %v90_v35, 7  ;;  %s705_s4 = smov [#allocation12]  }
  0x60   :  { %v540_v11 = vld [vmem:[#allocation9] sm:$0xff]   ;;  %482 = vmatprep.subr.bf16.mxu1 %v539_v10  ;;  %v542_v14 = vld [vmem:[#allocation9 + $0x8] sm:$0xff]   ;;  %v544_v18 = vld [vmem:[#allocation9 + $0x10] sm:$0xff]   ;;  %s438_s28 = sshll.u32 %s705_s4, 4  ;;  %s439_s28 = int_to_ptr.vmem [resolvable:$true] %s438_s28 }
  0x61   :  { %205 = vmatpush1.bf16.msra.mxu0 %v520_v4  ;;  %483 = vmatpush3.bf16.msra.mxu1 %v540_v11  ;;  %v532_v17 = vld [vmem:[#allocation6 + $0x50] ss:$8 sps:$4 sm:$0xff]   ;;  %v533_v20 = vld [vmem:[#allocation6 + $0x64] ss:$8 sps:$4 sm:$0xff]   ;;  %v535_v21 = vld [vmem:[#allocation6 + $0x60] ss:$8 sps:$4 sm:$0xff]   ;;  %p670_p13 = scmp.lt.s32.totalorder %s439_s28, %s439_s28 }
  0x62   :  { %206 = vmatprep.subr.bf16.mxu0 %v521_v5  ;;  %484 = vmatprep.subr.bf16.mxu1 %v541_v13  ;;  %v545_v19 = vld [vmem:[#allocation9 + $0x58] sm:$0xff]   ;;  %v547_v24 = vld [vmem:[#allocation9 + $0x60] sm:$0xff]   ;;  %v549_v28 = vld [vmem:[#allocation9 + $0x68] sm:$0xff]   ;;  %v92_v37 = vsub.s32 0, %v91_v36  ;;  %v96_v39 = vsub.s32 1, %v91_v36  ;;  %s665_s29 = scalar_lea.vmem %s439_s28, 128 }
  0x63   :  { %v536_v22 = vld [vmem:[#allocation6 + $0x74] ss:$8 sps:$4 sm:$0xff]   ;;  %v548_v25 = vld [vmem:[#allocation9 + $0x20] sm:$0xff]   ;;  %v538_v26 = vld [vmem:[#allocation6 + $0x70] ss:$8 sps:$4 sm:$0xff]   ;;  %p666_p12 = scmp.ne.s32.totalorder %s439_s28, %s665_s29  ;;  %p671_p0 = scmp.lt.s32.totalorder %s665_s29, %s665_s29 }
  0x64   :  { %v546_v23 = vld [vmem:[#allocation9 + $0x18] sm:$0xff]   ;;  %v550_v30 = vld [vmem:[#allocation9 + $0x28] sm:$0xff]   ;;  %v551_v31 = vld [vmem:[#allocation9 + $0x70] sm:$0xff]  }
  0x65   :  { %207 = vmatpush1.bf16.msra.mxu0 %v523_v6  ;;  %485 = vmatpush3.bf16.msra.mxu1 %v542_v14  ;;  %v104_v27 = vld [vmem:[#allocation3] sm:$0xff]  ;;  %v88_v38 = vld [vmem:[#allocation8] sm:$0x3]  ;;  %v465_v53 = vld [vmem:[#allocation11] ss:$0 sm:$0xff]  ;;  %p672_p1 = por %p671_p0, %p670_p13 }
  0x66   :  { %208 = vmatprep.subr.bf16.mxu0 %v524_v7  ;;  %486 = vmatprep.subr.bf16.mxu1 %v543_v15  ;;  %v105_v29 = vpack.c.bf16 %v104_v27, %v104_v27  ;;  %v552_v32 = vld [vmem:[#allocation9 + $0x30] sm:$0xff]   ;;  %v553_v33 = vld [vmem:[#allocation9 + $0x78] sm:$0xff]   ;;  %v93_v40 = vrot.slane %v88_v38, %v92_v37  ;;  %v97_v41 = vrot.slane %v88_v38, %v96_v39 }
  0x67   :  { %v554_v34 = vld [vmem:[#allocation9 + $0x38] sm:$0xff]   ;;  %p673_p2 = pnand %p672_p1, %p666_p12 }
  0x69   :  { %209 = vmatpush1.bf16.msra.mxu0 %v526_v8  ;;  %487 = vmatpush3.bf16.msra.mxu1 %v544_v18 }
  0x6a   :  { %210 = vmatprep.subr.bf16.mxu0 %v527_v9  ;;  %488 = vmatprep.subr.bf16.mxu1 %v545_v19 }
  0x6d   :  { %211 = vmatpush1.bf16.msra.mxu0 %v529_v12  ;;  %489 = vmatpush3.bf16.msra.mxu1 %v546_v23 }
  0x6e   :  { %212 = vmatprep.subr.bf16.mxu0 %v530_v16  ;;  %490 = vmatprep.subr.bf16.mxu1 %v547_v24 }
  0x71   :  { %213 = vmatpush1.bf16.msra.mxu0 %v532_v17  ;;  %491 = vmatpush3.bf16.msra.mxu1 %v548_v25 }
  0x72   :  { %214 = vmatprep.subr.bf16.mxu0 %v533_v20  ;;  %492 = vmatprep.subr.bf16.mxu1 %v549_v28 }
  0x75   :  { %215 = vmatpush1.bf16.msra.mxu0 %v535_v21  ;;  %493 = vmatpush3.bf16.msra.mxu1 %v550_v30 }
  0x76   :  { %216 = vmatprep.subr.bf16.mxu0 %v536_v22  ;;  %494 = vmatprep.subr.bf16.mxu1 %v551_v31 }
  0x79   :  { %217 = vmatpush1.bf16.msra.mxu0 %v538_v26  ;;  %495 = vmatpush3.bf16.msra.mxu1 %v552_v32 }
  0x7a   :  { %496 = vmatprep.subr.bf16.mxu1 %v553_v33 }
  0x7c   :  { %235 = vmatmul.mubr.bf16.vlgmr.msra.gmra.mrb[0].mxu0 %v105_v29 }
  0x7d   :  { %497 = vmatpush3.bf16.msra.mxu1 %v554_v34 }
 0x14f   :  { %v236_v42 = vpop.f32.mrb[0].mxu0 }
 0x150   :  { %v243_v43 = vadd.f32 %v236_v42, %v93_v40  ;;  %v238_v44 = vpop.f32.mrb[1].mxu0 }
 0x151   :  { %v244_v45 = vadd.f32 %v238_v44, %v97_v41  ;;  %v240_v46 = vpop.f32.mrb[2].mxu0 }
 0x152   :  { %v252_v47 = vmax.f32 %v243_v43, 0.0  ;;  %v241_v48 = vpop.f32.mrb[3].mxu0 }
 0x153   :  { %v253_v49 = vmax.f32 %v244_v45, 0.0 }
 0x154   :  { %v254_v51 = vpack.c.bf16 %v252_v47, %v252_v47 }
 0x155   :  { %v255_v50 = vpack.c.bf16 %v253_v49, %v253_v49 }
 0x157   :  { %423 = vmatprep.mubr.bf16.mxu1 %v255_v50 }
 0x158   :  { %424 = vmatmul.mubr.bf16.vlgmr.msra.gmra.mrb[0].mxu1 %v254_v51 }
 0x22b   :  { %v498_v52 = vpop.f32.mrb[0].mxu1 }
 0x22c   :  { %v499_v54 = vpop.f32.mrb[1].mxu1 }
 0x22d   :  { %v500_v55 = vadd.f32 %v499_v54, %v498_v52  ;;  %v501_v56 = vpop.f32.mrb[2].mxu1 }
 0x22e   :  { %v502_v57 = vpop.f32.mrb[3].mxu1 }
 0x22f   :  { %v426_v58 = vadd.f32 %v500_v55, %v465_v53 }
 0x231   :  { %431 = vst [vmem:[#allocation12] sm:$0xff] %v426_v58 }
 0x232   :  { %676 = shalt.err (!%p673_p2)
}
 0x233   :  { %s677_s6 = scalar_lea.hbm %s813_s5, 128 }
 0x234   :  { %p678_p3 = scmp.ne.s32.totalorder %s813_s5, %s677_s6  ;;  %p681_p4 = scmp.lt.u32.totalorder %s677_s6, %s813_s5 }
 0x236   :  { %p683_p5 = pnand %p681_p4, %p678_p3 }
 0x238   :  { %686 = shalt.err (!%p683_p5)
}
 0x239   :  { %441 = dma.vmem_to_hbm [thread:$0]  %s439_s28, 128, %s813_s5, [#allocation5]  }
 0x23a   :  { %693 = dma.done.wait [#allocation5], 128  }
 0x23b   :  { %694 = vsyncadd [#allocation5], 4294967168 }
 0x23c   :  { %445 = vsyncpa [#allocation4], 1 }
 0x23d   :  { %446 = vsyncpa [#allocation7], 1 }
 0x23e   :  { %447 = vsyncpa [#allocation10], 1 }
 0x23f   :  { %448 = vsyncpa [#allocation5], 1 }

</bundles_post_ra>
